<compile_context>
chip_gen: v7x
topology: tpu7x:2x2x1
jax: 0.10.0
libtpu: 0.0.40
codegen_flags: <defaults>
</compile_context>

<pallas_src>
import jax
import jax.numpy as jnp
from jax.experimental import pallas as pl
from jax.experimental.pallas import tpu as pltpu


def _round_up(x, m):
    return ((x + m - 1) // m) * m


def _mlp_kernel(x_ref, w1_ref, b1_ref, w2_ref, b2_ref, o_ref):
    # f32 throughout; MXU accumulates in f32. Not MXU-bound at these dims,
    # so full precision is effectively free and matches nn.Linear exactly.
    h = jnp.dot(x_ref[...], w1_ref[...], preferred_element_type=jnp.float32)
    h = jnp.maximum(h + b1_ref[...], 0.0)
    y = jnp.dot(h, w2_ref[...], preferred_element_type=jnp.float32)
    o_ref[...] = (y + b2_ref[...]).astype(o_ref.dtype)


def mlp_predictor(feats, w1, b1, w2, b2, *, tile_b=8192):
    """feats: (B, in_feats); w1: (in_feats, hidden); b1: (hidden,);
    w2: (hidden, n_tasks); b2: (n_tasks,). Returns (B, n_tasks) in feats.dtype."""
    B, in_feats = feats.shape
    hidden = w1.shape[1]
    n_tasks = w2.shape[1]

    # Batch tile: sublane-aligned (multiple of 8 for f32), shrunk for tiny B.
    # Default 8192 amortizes per-grid-step overhead while the f32 hidden
    # intermediate (tile_b*hidden*4 B) and double-buffered x/out tiles stay
    # well inside scoped VMEM on v5e/v6e/v7x.
    tile_b = _round_up(max(1, min(tile_b, B)), 8)
    grid = (pl.cdiv(B, tile_b),)  # last block may be partial; Pallas masks it.

    # Biases as 2-D rows for broadcasting against (tile_b, feature) tiles.
    b1_2d = b1.reshape(1, hidden).astype(jnp.float32)
    b2_2d = b2.reshape(1, n_tasks).astype(jnp.float32)

    itemsize = jnp.dtype(feats.dtype).itemsize
    cost = pl.CostEstimate(
        flops=2 * B * (in_feats * hidden + hidden * n_tasks),
        transcendentals=0,
        bytes_accessed=(
            B * (in_feats + n_tasks) * itemsize
            + (in_feats * hidden + hidden + hidden * n_tasks + n_tasks) * 4
        ),
    )

    return pl.pallas_call(
        _mlp_kernel,
        out_shape=jax.ShapeDtypeStruct((B, n_tasks), feats.dtype),
        grid_spec=pltpu.PrefetchScalarGridSpec(
            num_scalar_prefetch=0,
            grid=grid,
            in_specs=[
                # Activations stream tile-by-tile over the batch.
                # (If profiling ever shows the x DMA exposed, add
                #  pipeline_mode=pl.Buffered(3) here only.)
                pl.BlockSpec((tile_b, in_feats), lambda i: (i, 0)),
                # Tiny weights/biases: constant index maps -> VMEM-resident.
                pl.BlockSpec((in_feats, hidden), lambda i: (0, 0)),
                pl.BlockSpec((1, hidden), lambda i: (0, 0)),
                pl.BlockSpec((hidden, n_tasks), lambda i: (0, 0)),
                pl.BlockSpec((1, n_tasks), lambda i: (0, 0)),
            ],
            out_specs=pl.BlockSpec((tile_b, n_tasks), lambda i: (i, 0)),
        ),
        compiler_params=pltpu.CompilerParams(
            # Rows are independent: shard the batch axis across TensorCores (v7x).
            dimension_semantics=("parallel",),
        ),
        cost_estimate=cost,
    )(feats, w1, b1_2d, w2, b2_2d)


def _ref_mlp(feats, w1, b1, w2, b2):
    h = jnp.maximum(feats @ w1 + b1, 0.0)
    return h @ w2 + b2


if __name__ == "__main__":
    # Shapes implied by the module: feats (B, in_feats) -> (B, n_tasks)
    B, in_feats, hidden_feats, n_tasks = 8, 32, 64, 4

    key = jax.random.PRNGKey(0)
    k_x, k_w1, k_b1, k_w2, k_b2, k_x2 = jax.random.split(key, 6)

    feats = jax.random.normal(k_x, (B, in_feats), dtype=jnp.float32)

    # Deterministic param init (PyTorch-Linear-style uniform bounds).
    bound1 = 1.0 / (in_feats ** 0.5)
    bound2 = 1.0 / (hidden_feats ** 0.5)
    w1 = jax.random.uniform(k_w1, (in_feats, hidden_feats), jnp.float32, -bound1, bound1)
    b1 = jax.random.uniform(k_b1, (hidden_feats,), jnp.float32, -bound1, bound1)
    w2 = jax.random.uniform(k_w2, (hidden_feats, n_tasks), jnp.float32, -bound2, bound2)
    b2 = jax.random.uniform(k_b2, (n_tasks,), jnp.float32, -bound2, bound2)

    # Small-batch path (single grid step, tile_b clamped to 8).
    out = jax.block_until_ready(mlp_predictor(feats, w1, b1, w2, b2))
    ref = _ref_mlp(feats, w1, b1, w2, b2)
    assert out.shape == (B, n_tasks)
    # f32 operands with f32 accumulation -> tight tolerance vs reference.
    assert jnp.allclose(out, ref, atol=1e-3, rtol=1e-3), float(jnp.abs(out - ref).max())

    # Multi-tile path: non-divisible batch + multiple grid steps (exercises
    # the masked/partial final block and VMEM-resident weights across steps).
    B2 = 40
    feats2 = jax.random.normal(k_x2, (B2, in_feats), dtype=jnp.float32)
    out2 = jax.block_until_ready(mlp_predictor(feats2, w1, b1, w2, b2, tile_b=16))
    ref2 = _ref_mlp(feats2, w1, b1, w2, b2)
    assert out2.shape == (B2, n_tasks)
    assert jnp.allclose(out2, ref2, atol=1e-3, rtol=1e-3), float(jnp.abs(out2 - ref2).max())

    print("KERNEL_OK")
</pallas_src>

<mosaic_0001>
module attributes {stable_mosaic.version = 11 : i64} {
  func.func @_mlp_kernel(%arg0: i32, %arg1: memref<8x32xf32, #tpu.memory_space<vmem>>, %arg2: memref<32x64xf32, #tpu.memory_space<vmem>>, %arg3: memref<1x64xf32, #tpu.memory_space<vmem>>, %arg4: memref<64x4xf32, #tpu.memory_space<vmem>>, %arg5: memref<1x4xf32, #tpu.memory_space<vmem>>, %arg6: memref<8x4xf32, #tpu.memory_space<vmem>>) attributes {dimension_semantics = [#tpu.dimension_semantics<parallel>], iteration_bounds = array<i64: 1>, scalar_prefetch = 0 : i64, scratch_operands = 0 : i64, tpu.core_type = #tpu.core_type<tc>, window_params = [{transform_indices = @transform_0, window_bounds = array<i64: 8, 32>}, {pipeline_mode = #tpu.pipeline_mode<synchronous>, transform_indices = @transform_1, window_bounds = array<i64: 32, 64>}, {pipeline_mode = #tpu.pipeline_mode<synchronous>, transform_indices = @transform_2, window_bounds = array<i64: 1, 64>}, {pipeline_mode = #tpu.pipeline_mode<synchronous>, transform_indices = @transform_3, window_bounds = array<i64: 64, 4>}, {pipeline_mode = #tpu.pipeline_mode<synchronous>, transform_indices = @transform_4, window_bounds = array<i64: 1, 4>}, {transform_indices = @transform_5, window_bounds = array<i64: 8, 4>}]} {
    %c0 = arith.constant 0 : index
    %c0_0 = arith.constant 0 : index
    %0 = vector.load %arg1[%c0, %c0_0] : memref<8x32xf32, #tpu.memory_space<vmem>>, vector<8x32xf32>
    %c0_1 = arith.constant 0 : index
    %c0_2 = arith.constant 0 : index
    %1 = vector.load %arg2[%c0_1, %c0_2] : memref<32x64xf32, #tpu.memory_space<vmem>>, vector<32x64xf32>
    %cst = arith.constant dense<0.000000e+00> : vector<8x64xf32>
    %2 = tpu.matmul %0, %1, %cst {dimension_numbers = #tpu.dot_dimension_numbers<[1], [0], [0], [1], [0, 0, 1, 1], [], []>} : vector<8x32xf32>, vector<32x64xf32>, vector<8x64xf32> -> vector<8x64xf32>
    %c0_3 = arith.constant 0 : index
    %c0_4 = arith.constant 0 : index
    %3 = vector.load %arg3[%c0_3, %c0_4] : memref<1x64xf32, #tpu.memory_space<vmem>>, vector<1x64xf32>
    %4 = vector.broadcast %3 : vector<1x64xf32> to vector<8x64xf32>
    %5 = arith.addf %2, %4 : vector<8x64xf32>
    %cst_5 = arith.constant 0.000000e+00 : f32
    %6 = vector.broadcast %cst_5 : f32 to vector<8x64xf32>
    %7 = arith.maximumf %5, %6 : vector<8x64xf32>
    %c0_6 = arith.constant 0 : index
    %c0_7 = arith.constant 0 : index
    %8 = vector.load %arg4[%c0_6, %c0_7] : memref<64x4xf32, #tpu.memory_space<vmem>>, vector<64x4xf32>
    %cst_8 = arith.constant dense<0.000000e+00> : vector<8x4xf32>
    %9 = tpu.matmul %7, %8, %cst_8 {dimension_numbers = #tpu.dot_dimension_numbers<[1], [0], [0], [1], [0, 0, 1, 1], [], []>} : vector<8x64xf32>, vector<64x4xf32>, vector<8x4xf32> -> vector<8x4xf32>
    %c0_9 = arith.constant 0 : index
    %c0_10 = arith.constant 0 : index
    %10 = vector.load %arg5[%c0_9, %c0_10] : memref<1x4xf32, #tpu.memory_space<vmem>>, vector<1x4xf32>
    %11 = vector.broadcast %10 : vector<1x4xf32> to vector<8x4xf32>
    %12 = arith.addf %9, %11 : vector<8x4xf32>
    %c0_11 = arith.constant 0 : index
    %c0_12 = arith.constant 0 : index
    %13 = vector.load %arg6[%c0_11, %c0_12] : memref<8x4xf32, #tpu.memory_space<vmem>>, vector<8x4xf32>
    tpu.vector_store %arg6[%c0_11, %c0_12], %12 {strides = array<i32>} : memref<8x4xf32, #tpu.memory_space<vmem>>, vector<8x4xf32>,
    return
  }
  func.func @transform_0(%arg0: i32) -> (i32, i32) {
    %c0_i32 = arith.constant 0 : i32
    %c0_i32_0 = arith.constant 0 : i32
    return %arg0, %c0_i32 : i32, i32
  }
  func.func @transform_1(%arg0: i32) -> (i32, i32) {
    %c0_i32 = arith.constant 0 : i32
    %c0_i32_0 = arith.constant 0 : i32
    %c0_i32_1 = arith.constant 0 : i32
    return %c0_i32, %c0_i32_0 : i32, i32
  }
  func.func @transform_2(%arg0: i32) -> (i32, i32) {
    %c0_i32 = arith.constant 0 : i32
    %c0_i32_0 = arith.constant 0 : i32
    %c0_i32_1 = arith.constant 0 : i32
    return %c0_i32, %c0_i32_0 : i32, i32
  }
  func.func @transform_3(%arg0: i32) -> (i32, i32) {
    %c0_i32 = arith.constant 0 : i32
    %c0_i32_0 = arith.constant 0 : i32
    %c0_i32_1 = arith.constant 0 : i32
    return %c0_i32, %c0_i32_0 : i32, i32
  }
  func.func @transform_4(%arg0: i32) -> (i32, i32) {
    %c0_i32 = arith.constant 0 : i32
    %c0_i32_0 = arith.constant 0 : i32
    %c0_i32_1 = arith.constant 0 : i32
    return %c0_i32, %c0_i32_0 : i32, i32
  }
  func.func @transform_5(%arg0: i32) -> (i32, i32) {
    %c0_i32 = arith.constant 0 : i32
    %c0_i32_0 = arith.constant 0 : i32
    return %arg0, %c0_i32 : i32, i32
  }
}

</mosaic_0001>

<bundles_post_ra>
// kernel: tpu_custom_call.1
= control target key start
LH: loop header
LB: loop body
LE: loop exit
PB: predicated region body
PF: predicated region fallthrough
CT: control target
= control target key end

     0   :  { %v271_v0 = vmov 0.0|0.0   ;;  %vm272_vm0 = vmmov 0   ;;  %v273_v4 = vmov 0.0   ;;  %vm32_vm1 = vcmask 261120   ;;  %s352_s1 = inlined_call_operand.vmem [shape: f32[32,64], index: 1, kind: input, shape index: {}]   ;;  %s353_s3 = inlined_call_operand.vmem [shape: f32[64,4], index: 3, kind: input, shape index: {}]   ;;  %s354_s0 = inlined_call_operand.vmem [shape: f32[8,32], index: 0, kind: input, shape index: {}]   ;;  %s355_s2 = inlined_call_operand.vmem [shape: f32[1,64], index: 2, kind: input, shape index: {}]   ;;  %s356_s4 = inlined_call_operand.vmem [shape: f32[1,4], index: 4, kind: input, shape index: {}]   ;;  %s357_s5 = inlined_call_operand.vmem [shape: f32[8,4], index: 5, kind: output, shape index: {}]  }
   0x1   :  { %250 = vmatprep.subr.bf16.mxu0 %v271_v0  ;;  %v21_v1 = vld [vmem:[%s352_s1] sm:$0xff]  ;;  %v22_v2 = vld [vmem:[%s352_s1 + $0x8] sm:$0xff]  ;;  %v23_v3 = vld [vmem:[%s352_s1 + $0x10] sm:$0xff]  ;;  %228 = vmatprep.mubr.msk.f32.mxu0 %vm272_vm0, %v273_v4  ;;  %vm122_vm2 = vcmask 523264   ;;  %vm196_vm3 = vcmask 31744  }
   0x2   :  { %v251_v5 = vpack.c.bf16 %v22_v2, %v21_v1  ;;  %v24_v6 = vld [vmem:[%s352_s1 + $0x18] sm:$0xff]  ;;  %256 = vmatprep.subr.bf16.mxu1 %v271_v0  ;;  %v107_v7 = vld [vmem:[%s353_s3] sm:$0xff]  ;;  %247 = vmatprep.mubr.msk.f32.mxu1 %vm272_vm0, %v273_v4  ;;  %v108_v8 = vld [vmem:[%s353_s3 + $0x8] sm:$0xff] }
   0x3   :  { %v109_v9 = vld [vmem:[%s353_s3 + $0x10] sm:$0xff]  ;;  %v110_v10 = vld [vmem:[%s353_s3 + $0x18] sm:$0xff]  ;;  %v254_v11 = vpack.c.bf16 %v24_v6, %v23_v3  ;;  %v257_v12 = vpack.c.bf16 %v108_v8, %v107_v7  ;;  %v111_v14 = vld [vmem:[%s353_s3 + $0x20] sm:$0xff] }
   0x4   :  { %252 = vmatpush3.bf16.msra.mxu0 %v251_v5  ;;  %v260_v13 = vpack.c.bf16 %v110_v10, %v109_v9  ;;  %v112_v15 = vld [vmem:[%s353_s3 + $0x28] sm:$0xff]  ;;  %v20_v16 = vld [vmem:[%s354_s0] sm:$0xff]  ;;  %v113_v18 = vld [vmem:[%s353_s3 + $0x30] sm:$0xff] }
   0x5   :  { %253 = vmatprep.subr.bf16.mxu0 %v271_v0  ;;  %258 = vmatpush3.bf16.msra.mxu1 %v257_v12  ;;  %v263_v17 = vpack.c.bf16 %v112_v15, %v111_v14  ;;  %v114_v19 = vld [vmem:[%s353_s3 + $0x38] sm:$0xff]  ;;  %v202_v21 = vld [vmem:[%s355_s2] ss:$0 sm:$0xff] }
   0x6   :  { %259 = vmatprep.subr.bf16.mxu1 %v271_v0  ;;  %v266_v20 = vpack.c.bf16 %v114_v19, %v113_v18  ;;  %v204_v26 = vld [vmem:[%s356_s4] ss:$0 sm:$0xff] }
   0x8   :  { %255 = vmatpush3.bf16.msra.mxu0 %v254_v11 }
   0x9   :  { %261 = vmatpush3.bf16.msra.mxu1 %v260_v13 }
   0xa   :  { %262 = vmatprep.subr.bf16.mxu1 %v271_v0 }
   0xb   :  { %229 = vmatmul.mubr.msk.f32.vlgmr.msra.gmra.mrb[0].mxu0 %vm32_vm1, %v20_v16 }
   0xd   :  { %264 = vmatpush3.bf16.msra.mxu1 %v263_v17 }
   0xe   :  { %265 = vmatprep.subr.bf16.mxu1 %v271_v0 }
  0x11   :  { %267 = vmatpush3.bf16.msra.mxu1 %v266_v20 }
  0xde   :  { %v102_v22 = vpop.f32.mrb[0].mxu0 }
  0xdf   :  { %v103_v23 = vadd.f32 %v202_v21, %v102_v22  ;;  %v230_v24 = vpop.f32.mrb[1].mxu0 }
  0xe1   :  { %v106_v25 = vmax.f32 %v103_v23, 0.0 }
  0xe3   :  { %248 = vmatmul.mubr.msk.f32.vlgmr.msra.gmra.mrb[0].mxu1 %vm122_vm2, %v106_v25 }
 0x1b6   :  { %v192_v27 = vpop.f32.mrb[0].mxu1 }
 0x1b7   :  { %v193_v28 = vadd.f32 %v204_v26, %v192_v27  ;;  %v249_v29 = vpop.f32.mrb[1].mxu1 }
 0x1b9   :  { %197 = vst.msk [vmem:[%s357_s5] sm:$0xff] %vm196_vm3, %v193_v28 }

</bundles_post_ra>
